<compile_context>
chip_gen: v7x
topology: tpu7x:2x2x1
jax: 0.10.0
libtpu: 0.0.40
codegen_flags: <defaults>
</compile_context>

<pallas_src>
import functools
import math

import jax
import jax.numpy as jnp
from jax.experimental import pallas as pl
from jax.experimental.pallas import tpu as pltpu


def _elem_loss(d, p):
    """Elementwise loss matching torch L1Loss / MSELoss / SmoothL1Loss(beta=1)."""
    if p == 1:
        return jnp.abs(d)
    elif p == 2:
        return d * d
    elif p == 3:
        ad = jnp.abs(d)
        return jnp.where(ad < 1.0, 0.5 * d * d, ad - 0.5)
    else:
        raise ValueError("p must be 1, 2 or 3")


def _laplace_matrix(s, d_eff):
    """Real symmetric circulant matrix L with L @ v == ifft(m * fft(v)),
    m(k) = -4*(pi/D)^2 * k^2 (FFT ordering).  Exact because m is real/even."""
    k_max = s // 2
    k = jnp.concatenate(
        [jnp.arange(0, k_max + 1), jnp.arange(-k_max + 1, 0)]).astype(jnp.float32)
    m = -4.0 * (math.pi / d_eff) ** 2 * (k * k)                       # (s,)
    d = jnp.arange(s, dtype=jnp.float32)
    ang = (2.0 * math.pi / s) * jnp.outer(d, k)                       # (s, s)
    c = jnp.sum(jnp.cos(ang) * m[None, :], axis=1) / float(s)         # (s,)
    idx = (jnp.arange(s)[:, None] - jnp.arange(s)[None, :]) % s       # (s, s)
    return c[idx].astype(jnp.float32)                                 # L[i,j]=c[(i-j)%s]


def _helmholtz_kernel(bnd_ref,                       # (B,) f32 scalar-prefetch (SMEM)
                      d2_ref, mask_ref,              # resident (s,s) / (2,s,s) f32
                      a_ref, u_ref, fix_ref,         # (tb*s, s) blocks
                      out_ref,                       # (1, 8, 128) per-core partial
                      acc_ref,                       # (s, s) f32 VMEM accumulator
                      *, p, s, tb, steps_per_core, omega, w_pde, apply_crop_mask):
    g = pl.program_id(1)

    @pl.when(g == 0)
    def _init():
        acc_ref[...] = jnp.zeros_like(acc_ref)

    d2 = d2_ref[...]                        # (s, s) f32, resident across the grid
    crop_mask = mask_ref[0]                 # (s, s) f32 {0,1} crop mask
    bnd_w = mask_ref[1]                     # (s, s) f32 pre-scaled 4-edge weights

    base = (pl.program_id(0) * steps_per_core + g) * tb
    neg_w2 = -(omega * omega)

    # Column half of the spectral Laplacian for the whole block: one long-M
    # MXU matmul (M = tb*s) so the 256-wide MXUs on v6e/v7x see a long
    # streaming dimension instead of tb tiny 128x128x128 dots.
    # TODO(synk): if this loss drives training, use precision=HIGHEST on both
    # dots (default MXU precision rounds operands to bf16, ~1e-2 rel error).
    right = jnp.dot(u_ref[...].astype(jnp.float32), d2,
                    preferred_element_type=jnp.float32)               # (tb*s, s)

    for b in range(tb):                                               # static unroll
        rs = slice(b * s, (b + 1) * s)
        u_b = u_ref[rs, :].astype(jnp.float32)                        # (s, s)
        a_b = a_ref[rs, :].astype(jnp.float32)
        f_b = fix_ref[rs, :].astype(jnp.float32)
        # Row half (D2 @ u_b) per slab + precomputed column half.
        lap = jnp.dot(d2, u_b, preferred_element_type=jnp.float32) + right[rs, :]
        diff = lap - neg_w2 * (a_b * a_b) * f_b
        if apply_crop_mask:                 # skipped at trace time when crop == s
            diff = diff * crop_mask
        bval = bnd_ref[base + b]            # SMEM scalar read (scalar prefetch)
        acc_ref[...] += _elem_loss(diff, p) + _elem_loss(u_b - bval, p) * bnd_w

    # Single cross-lane reduce per core, at its last grid step.
    @pl.when(g == steps_per_core - 1)
    def _finalize():
        out_ref[...] = jnp.full(out_ref.shape, jnp.sum(acc_ref[...]) * w_pde,
                                jnp.float32)


def helmholtz_loss(inp, output, output_fix, *, omega=5.0 * math.pi / 2.0, p=1,
                   D=1.0, boundary_decay=1.0, pad_factor=0, in_size=128,
                   tb_max=8, num_cores=2, inputs_in_bf16=False):
    """Pallas equivalent of Helmholtz_loss_op(...)(input, output, output_fix)."""
    s = in_size
    crop = s - pad_factor
    d_eff = D + pad_factor / (s - pad_factor) * D
    B = inp.shape[0]
    assert inp.shape[1] >= 2 and inp.shape[-2:] == (s, s)
    assert s % 8 == 0, "spatial size must be a multiple of 8 (TPU sublane tile)"

    a = inp[:, 0, :, :]
    boundary = inp[:, 1, 0, 0].astype(jnp.float32)                   # (B,) -> SMEM
    u = output.reshape(B, s, s)
    fx = output_fix.reshape(B, s, s)
    if inputs_in_bf16:  # optional: halves HBM traffic on bandwidth-poor v5e
        a, u, fx = (x.astype(jnp.bfloat16) for x in (a, u, fx))

    # Flatten batch into the sublane axis: every big operand becomes a plain
    # 2-D (B*s, s) array (free contiguous reshape), blocks are lane-dense and
    # the long-M matmul needs no in-kernel reshape.
    a2 = a.reshape(B * s, s)
    u2 = u.reshape(B * s, s)
    f2 = fx.reshape(B * s, s)

    d2 = _laplace_matrix(s, d_eff)                                    # (s, s) f32

    rows = jnp.arange(s)[:, None]
    cols = jnp.arange(s)[None, :]
    crop_mask = ((rows < crop) & (cols < crop)).astype(jnp.float32)
    row_edge = ((rows == 0) | (rows == crop - 1)) & (cols < crop)
    col_edge = ((cols == 0) | (cols == crop - 1)) & (rows < crop)
    # Mean divisors folded into compile-time constants:
    #   total = S_pde/(B*crop*crop) + Boundary_decay*0.25*S_bnd/(B*crop)
    # Corners lie on one row edge and one column edge -> weight 2 (matches torch).
    bnd_scale = float(boundary_decay) * 0.25 * float(crop)
    bnd_weight = (row_edge.astype(jnp.float32)
                  + col_edge.astype(jnp.float32)) * bnd_scale
    masks = jnp.stack([crop_mask, bnd_weight], axis=0)                # (2, s, s)
    w_pde = 1.0 / float(B * crop * crop)

    # Batch block size TB: largest divisor of B <= tb_max, preferring one that
    # lets the batch blocks split evenly across num_cores (exact blocks, no
    # padding / masking needed).  VMEM budget: 3 * TB * s^2 * 4B * 2 buffers
    # ~= TB * 384 KiB at s=128 -> ~3 MiB at TB=8 (fits v5e/v6e/v7x defaults).
    cands = [t for t in range(min(B, tb_max), 0, -1) if B % t == 0]
    tb = cands[0]
    for t in cands:
        if (B // t) % max(num_cores, 1) == 0:
            tb = t
            break
    nb = B // tb
    # Split batch blocks across TensorCores (v7x has 2 per chip); each core
    # accumulates its own partial sum and writes its own output block.
    nc = num_cores if (num_cores > 1 and nb % num_cores == 0) else 1
    spc = nb // nc                                                    # steps per core

    kernel = functools.partial(
        _helmholtz_kernel, p=p, s=s, tb=tb, steps_per_core=spc,
        omega=float(omega), w_pde=w_pde, apply_crop_mask=(crop < s))

    blk = lambda c, g, bnd: (c * spc + g, 0)

    partials = pl.pallas_call(
        kernel,
        out_shape=jax.ShapeDtypeStruct((nc, 8, 128), jnp.float32),
        grid_spec=pltpu.PrefetchScalarGridSpec(
            num_scalar_prefetch=1,                                    # boundary -> SMEM
            grid=(nc, spc),
            in_specs=[
                pl.BlockSpec((s, s), lambda c, g, bnd: (0, 0)),       # D2 (resident)
                pl.BlockSpec((2, s, s), lambda c, g, bnd: (0, 0, 0)), # masks (resident)
                pl.BlockSpec((tb * s, s), blk),                       # a
                pl.BlockSpec((tb * s, s), blk),                       # u
                pl.BlockSpec((tb * s, s), blk),                       # fix
                # TODO(synk): if DMA is still exposed after TB blocking, add
                # pipeline_mode=pl.Buffered(3) to the three big specs above.
            ],
            out_specs=pl.BlockSpec((1, 8, 128), lambda c, g, bnd: (c, 0, 0)),
            scratch_shapes=[pltpu.VMEM((s, s), jnp.float32)],         # loss accumulator
        ),
        compiler_params=pltpu.CompilerParams(
            dimension_semantics=("parallel", "arbitrary")),
    )(boundary, d2, masks, a2, u2, f2)
    # Sum the per-core partials (each core replicated its scalar across its block).
    return jnp.sum(partials[:, 0, 0])


def _helmholtz_loss_ref(inp, output, output_fix, *, omega, p, D, boundary_decay,
                        pad_factor, in_size):
    """Pure-JAX reference mirroring the torch module (fft2 / irfft2 path)."""
    s = in_size
    crop = s - pad_factor
    d_eff = D + pad_factor / (s - pad_factor) * D
    B = inp.shape[0]
    a = inp[:, 0, :, :].astype(jnp.float32)
    u = output.reshape(B, s, s).astype(jnp.float32)
    fx = output_fix.reshape(B, s, s).astype(jnp.float32)
    boundary = inp[:, 1, 0, 0].astype(jnp.float32)[:, None]           # (B, 1)

    def loss_fn(x, y):
        return jnp.mean(_elem_loss(x - y, p))

    ones = jnp.ones((B, crop), jnp.float32)
    bl = 0.25 * (loss_fn(u[:, 0, :crop], boundary * ones)
                 + loss_fn(u[:, :crop, 0], boundary * ones)
                 + loss_fn(u[:, crop - 1, :crop], boundary * ones)
                 + loss_fn(u[:, :crop, crop - 1], boundary * ones))

    u_hat = jnp.fft.fft2(u, axes=(-2, -1))
    k_max = s // 2
    kv = jnp.concatenate(
        [jnp.arange(0, k_max + 1), jnp.arange(-k_max + 1, 0)]).astype(jnp.float32)
    mult = -4.0 * (jnp.pi / d_eff) ** 2 * (kv[:, None] ** 2 + kv[None, :] ** 2)
    lap = jnp.fft.irfft2((mult * u_hat)[..., : k_max + 1], axes=(-2, -1))
    target = -(omega ** 2) * a ** 2 * fx
    loss_pde = loss_fn(lap[..., :crop, :crop], target[..., :crop, :crop])
    return loss_pde + bl * boundary_decay


if __name__ == "__main__":
    omega = 5.0 * math.pi / 2.0
    D = 1.0
    key = jax.random.PRNGKey(0)

    def run_case(B, s, pad_factor, p, tb_max):
        k1, k2, k3 = jax.random.split(jax.random.fold_in(key, B * 1000 + s + p), 3)
        inp = jax.random.normal(k1, (B, 2, s, s), dtype=jnp.float32)
        out = jax.random.normal(k2, (B, 1, s, s), dtype=jnp.float32)
        fix = jax.random.normal(k3, (B, 1, s, s), dtype=jnp.float32)
        got = helmholtz_loss(inp, out, fix, omega=omega, p=p, D=D,
                             boundary_decay=1.0, pad_factor=pad_factor,
                             in_size=s, tb_max=tb_max)
        want = _helmholtz_loss_ref(inp, out, fix, omega=omega, p=p, D=D,
                                   boundary_decay=1.0, pad_factor=pad_factor,
                                   in_size=s)
        got, want = jax.block_until_ready((got, want))
        # Loose tolerance: default-precision MXU matmuls vs the XLA FFT path
        # in the reference (structural bugs would be O(1) relative off).
        assert jnp.allclose(got, want, rtol=4e-2, atol=1e-2), (
            (B, s, pad_factor, p), float(got), float(want))
        return got

    results = []
    # TB=2 per step, cropped domain (masks on), all three loss types, 2 "cores".
    for p in (1, 2, 3):
        results.append(run_case(B=4, s=16, pad_factor=4, p=p, tb_max=8))
    # TB=3 per step, uncropped fast path (crop == s), 2 "cores" x 1 step.
    results.append(run_case(B=6, s=16, pad_factor=0, p=2, tb_max=3))
    # TB=1, 2 "cores" x 2 accumulation steps per core.
    results.append(run_case(B=4, s=16, pad_factor=4, p=1, tb_max=1))

    jax.block_until_ready(results)
    print("KERNEL_OK")
</pallas_src>

<mosaic_0001>
module attributes {stable_mosaic.version = 11 : i64} {
  func.func @_helmholtz_kernel(%arg0: i32, %arg1: i32, %arg2: memref<4xf32, #tpu.memory_space<smem>>, %arg3: memref<16x16xf32, #tpu.memory_space<vmem>>, %arg4: memref<2x16x16xf32, #tpu.memory_space<vmem>>, %arg5: memref<32x16xf32, #tpu.memory_space<vmem>>, %arg6: memref<32x16xf32, #tpu.memory_space<vmem>>, %arg7: memref<32x16xf32, #tpu.memory_space<vmem>>, %arg8: memref<1x8x128xf32, #tpu.memory_space<vmem>>, %arg9: memref<16x16xf32, #tpu.memory_space<vmem>>) attributes {dimension_semantics = [#tpu.dimension_semantics<parallel>, #tpu.dimension_semantics<arbitrary>], iteration_bounds = array<i64: 2, 1>, scalar_prefetch = 1 : i64, scratch_operands = 1 : i64, tpu.core_type = #tpu.core_type<tc>, window_params = [{pipeline_mode = #tpu.pipeline_mode<synchronous>, transform_indices = @transform_0, window_bounds = array<i64: 16, 16>}, {pipeline_mode = #tpu.pipeline_mode<synchronous>, transform_indices = @transform_1, window_bounds = array<i64: 2, 16, 16>}, {transform_indices = @transform_2, window_bounds = array<i64: 32, 16>}, {transform_indices = @transform_3, window_bounds = array<i64: 32, 16>}, {transform_indices = @transform_4, window_bounds = array<i64: 32, 16>}, {transform_indices = @transform_5, window_bounds = array<i64: 1, 8, 128>}]} {
    %c0_i32 = arith.constant 0 : i32
    %0 = arith.cmpi eq, %arg1, %c0_i32 : i32
    %1 = arith.extui %0 : i1 to i32
    %c0_i32_0 = arith.constant 0 : i32
    %2 = arith.cmpi ne, %1, %c0_i32_0 : i32
    scf.if %2 {
      %cst_36 = arith.constant 0.000000e+00 : f32
      %64 = vector.broadcast %cst_36 : f32 to vector<16x16xf32>
      %c0_37 = arith.constant 0 : index
      %c0_38 = arith.constant 0 : index
      %65 = vector.load %arg9[%c0_37, %c0_38] : memref<16x16xf32, #tpu.memory_space<vmem>>, vector<16x16xf32>
      tpu.vector_store %arg9[%c0_37, %c0_38], %64 {strides = array<i32>} : memref<16x16xf32, #tpu.memory_space<vmem>>, vector<16x16xf32>,
    } else {
    }
    %c0 = arith.constant 0 : index
    %c0_1 = arith.constant 0 : index
    %3 = vector.load %arg3[%c0, %c0_1] : memref<16x16xf32, #tpu.memory_space<vmem>>, vector<16x16xf32>
    %c0_2 = arith.constant 0 : index
    %c0_3 = arith.constant 0 : index
    %c0_4 = arith.constant 0 : index
    %4 = vector.load %arg4[%c0_2, %c0_3, %c0_4] : memref<2x16x16xf32, #tpu.memory_space<vmem>>, vector<1x16x16xf32>
    %5 = vector.shape_cast %4 : vector<1x16x16xf32> to vector<16x16xf32>
    %c1 = arith.constant 1 : index
    %c0_5 = arith.constant 0 : index
    %c0_6 = arith.constant 0 : index
    %6 = vector.load %arg4[%c1, %c0_5, %c0_6] : memref<2x16x16xf32, #tpu.memory_space<vmem>>, vector<1x16x16xf32>
    %7 = vector.shape_cast %6 : vector<1x16x16xf32> to vector<16x16xf32>
    %c1_i32 = arith.constant 1 : i32
    %8 = arith.muli %arg0, %c1_i32 : i32
    %9 = arith.addi %8, %arg1 : i32
    %c2_i32 = arith.constant 2 : i32
    %10 = arith.muli %9, %c2_i32 : i32
    %c0_7 = arith.constant 0 : index
    %c0_8 = arith.constant 0 : index
    %11 = vector.load %arg6[%c0_7, %c0_8] : memref<32x16xf32, #tpu.memory_space<vmem>>, vector<32x16xf32>
    %cst = arith.constant dense<0.000000e+00> : vector<32x16xf32>
    %12 = tpu.matmul %11, %3, %cst {dimension_numbers = #tpu.dot_dimension_numbers<[1], [0], [0], [1], [0, 0, 1, 1], [], []>} : vector<32x16xf32>, vector<16x16xf32>, vector<32x16xf32> -> vector<32x16xf32>
    %c0_9 = arith.constant 0 : index
    %c0_10 = arith.constant 0 : index
    %13 = vector.load %arg6[%c0_9, %c0_10] : memref<32x16xf32, #tpu.memory_space<vmem>>, vector<16x16xf32>
    %c0_11 = arith.constant 0 : index
    %c0_12 = arith.constant 0 : index
    %14 = vector.load %arg5[%c0_11, %c0_12] : memref<32x16xf32, #tpu.memory_space<vmem>>, vector<16x16xf32>
    %c0_13 = arith.constant 0 : index
    %c0_14 = arith.constant 0 : index
    %15 = vector.load %arg7[%c0_13, %c0_14] : memref<32x16xf32, #tpu.memory_space<vmem>>, vector<16x16xf32>
    %cst_15 = arith.constant dense<0.000000e+00> : vector<16x16xf32>
    %16 = tpu.matmul %3, %13, %cst_15 {dimension_numbers = #tpu.dot_dimension_numbers<[1], [0], [0], [1], [0, 0, 1, 1], [], []>} : vector<16x16xf32>, vector<16x16xf32>, vector<16x16xf32> -> vector<16x16xf32>
    %17 = vector.extract_strided_slice %12 {offsets = [0, 0], sizes = [16, 16], strides = [1, 1]} : vector<32x16xf32> to vector<16x16xf32>
    %18 = arith.addf %16, %17 : vector<16x16xf32>
    %19 = arith.mulf %14, %14 : vector<16x16xf32>
    %cst_16 = arith.constant -61.6850281 : f32
    %20 = vector.broadcast %cst_16 : f32 to vector<16x16xf32>
    %21 = arith.mulf %20, %19 : vector<16x16xf32>
    %22 = arith.mulf %21, %15 : vector<16x16xf32>
    %23 = arith.subf %18, %22 : vector<16x16xf32>
    %24 = arith.mulf %23, %5 : vector<16x16xf32>
    %c0_i32_17 = arith.constant 0 : i32
    %25 = arith.addi %10, %c0_i32_17 : i32
    %26 = arith.index_cast %25 : i32 to index
    %27 = memref.load %arg2[%26] : memref<4xf32, #tpu.memory_space<smem>>
    %c0_18 = arith.constant 0 : index
    %c0_19 = arith.constant 0 : index
    %28 = vector.load %arg9[%c0_18, %c0_19] : memref<16x16xf32, #tpu.memory_space<vmem>>, vector<16x16xf32>
    %29 = math.absf %24 : vector<16x16xf32>
    %30 = vector.broadcast %27 : f32 to vector<16x16xf32>
    %31 = arith.subf %13, %30 : vector<16x16xf32>
    %32 = math.absf %31 : vector<16x16xf32>
    %33 = arith.mulf %32, %7 : vector<16x16xf32>
    %34 = arith.addf %29, %33 : vector<16x16xf32>
    %35 = arith.addf %28, %34 : vector<16x16xf32>
    %c0_20 = arith.constant 0 : index
    %c0_21 = arith.constant 0 : index
    %36 = vector.load %arg9[%c0_20, %c0_21] : memref<16x16xf32, #tpu.memory_space<vmem>>, vector<16x16xf32>
    tpu.vector_store %arg9[%c0_20, %c0_21], %35 {strides = array<i32>} : memref<16x16xf32, #tpu.memory_space<vmem>>, vector<16x16xf32>,
    %c16 = arith.constant 16 : index
    %c0_22 = arith.constant 0 : index
    %37 = vector.load %arg6[%c16, %c0_22] : memref<32x16xf32, #tpu.memory_space<vmem>>, vector<16x16xf32>
    %c16_23 = arith.constant 16 : index
    %c0_24 = arith.constant 0 : index
    %38 = vector.load %arg5[%c16_23, %c0_24] : memref<32x16xf32, #tpu.memory_space<vmem>>, vector<16x16xf32>
    %c16_25 = arith.constant 16 : index
    %c0_26 = arith.constant 0 : index
    %39 = vector.load %arg7[%c16_25, %c0_26] : memref<32x16xf32, #tpu.memory_space<vmem>>, vector<16x16xf32>
    %cst_27 = arith.constant dense<0.000000e+00> : vector<16x16xf32>
    %40 = tpu.matmul %3, %37, %cst_27 {dimension_numbers = #tpu.dot_dimension_numbers<[1], [0], [0], [1], [0, 0, 1, 1], [], []>} : vector<16x16xf32>, vector<16x16xf32>, vector<16x16xf32> -> vector<16x16xf32>
    %41 = vector.extract_strided_slice %12 {offsets = [16, 0], sizes = [16, 16], strides = [1, 1]} : vector<32x16xf32> to vector<16x16xf32>
    %42 = arith.addf %40, %41 : vector<16x16xf32>
    %43 = arith.mulf %38, %38 : vector<16x16xf32>
    %cst_28 = arith.constant -61.6850281 : f32
    %44 = vector.broadcast %cst_28 : f32 to vector<16x16xf32>
    %45 = arith.mulf %44, %43 : vector<16x16xf32>
    %46 = arith.mulf %45, %39 : vector<16x16xf32>
    %47 = arith.subf %42, %46 : vector<16x16xf32>
    %48 = arith.mulf %47, %5 : vector<16x16xf32>
    %c1_i32_29 = arith.constant 1 : i32
    %49 = arith.addi %10, %c1_i32_29 : i32
    %50 = arith.index_cast %49 : i32 to index
    %51 = memref.load %arg2[%50] : memref<4xf32, #tpu.memory_space<smem>>
    %c0_30 = arith.constant 0 : index
    %c0_31 = arith.constant 0 : index
    %52 = vector.load %arg9[%c0_30, %c0_31] : memref<16x16xf32, #tpu.memory_space<vmem>>, vector<16x16xf32>
    %53 = math.absf %48 : vector<16x16xf32>
    %54 = vector.broadcast %51 : f32 to vector<16x16xf32>
    %55 = arith.subf %37, %54 : vector<16x16xf32>
    %56 = math.absf %55 : vector<16x16xf32>
    %57 = arith.mulf %56, %7 : vector<16x16xf32>
    %58 = arith.addf %53, %57 : vector<16x16xf32>
    %59 = arith.addf %52, %58 : vector<16x16xf32>
    %c0_32 = arith.constant 0 : index
    %c0_33 = arith.constant 0 : index
    %60 = vector.load %arg9[%c0_32, %c0_33] : memref<16x16xf32, #tpu.memory_space<vmem>>, vector<16x16xf32>
    tpu.vector_store %arg9[%c0_32, %c0_33], %59 {strides = array<i32>} : memref<16x16xf32, #tpu.memory_space<vmem>>, vector<16x16xf32>,
    %c0_i32_34 = arith.constant 0 : i32
    %61 = arith.cmpi eq, %arg1, %c0_i32_34 : i32
    %62 = arith.extui %61 : i1 to i32
    %c0_i32_35 = arith.constant 0 : i32
    %63 = arith.cmpi ne, %62, %c0_i32_35 : i32
    scf.if %63 {
      %c0_36 = arith.constant 0 : index
      %c0_37 = arith.constant 0 : index
      %64 = vector.load %arg9[%c0_36, %c0_37] : memref<16x16xf32, #tpu.memory_space<vmem>>, vector<16x16xf32>
      %65 = vector.shape_cast %64 : vector<16x16xf32> to vector<1x16x16xf32>
      %cst_38 = arith.constant dense<0.000000e+00> : vector<1xf32>
      %66 = vector.multi_reduction <add>, %65, %cst_38 [1, 2] : vector<1x16x16xf32> to vector<1xf32>
      %67 = vector.shape_cast %66 : vector<1xf32> to vector<1x1x1xf32>
      %68 = vector.extract %67[0, 0, 0] : f32 from vector<1x1x1xf32>
      %cst_39 = arith.constant 0.00173611112 : f32
      %69 = arith.mulf %68, %cst_39 : f32
      %70 = vector.broadcast %69 : f32 to vector<1x8x128xf32>
      %c0_40 = arith.constant 0 : index
      %c0_41 = arith.constant 0 : index
      %c0_42 = arith.constant 0 : index
      %71 = vector.load %arg8[%c0_40, %c0_41, %c0_42] : memref<1x8x128xf32, #tpu.memory_space<vmem>>, vector<1x8x128xf32>
      tpu.vector_store %arg8[%c0_40, %c0_41, %c0_42], %70 {strides = array<i32>} : memref<1x8x128xf32, #tpu.memory_space<vmem>>, vector<1x8x128xf32>,
    } else {
    }
    return
  }
  func.func @transform_0(%arg0: i32, %arg1: i32, %arg2: memref<4xf32, #tpu.memory_space<smem>>) -> (i32, i32) {
    %c0_i32 = arith.constant 0 : i32
    %c0_i32_0 = arith.constant 0 : i32
    %c0_i32_1 = arith.constant 0 : i32
    return %c0_i32, %c0_i32_0 : i32, i32
  }
  func.func @transform_1(%arg0: i32, %arg1: i32, %arg2: memref<4xf32, #tpu.memory_space<smem>>) -> (i32, i32, i32) {
    %c0_i32 = arith.constant 0 : i32
    %c0_i32_0 = arith.constant 0 : i32
    %c0_i32_1 = arith.constant 0 : i32
    %c0_i32_2 = arith.constant 0 : i32
    return %c0_i32, %c0_i32_0, %c0_i32_1 : i32, i32, i32
  }
  func.func @transform_2(%arg0: i32, %arg1: i32, %arg2: memref<4xf32, #tpu.memory_space<smem>>) -> (i32, i32) {
    %c1_i32 = arith.constant 1 : i32
    %0 = arith.muli %arg0, %c1_i32 : i32
    %1 = arith.addi %0, %arg1 : i32
    %c0_i32 = arith.constant 0 : i32
    %c0_i32_0 = arith.constant 0 : i32
    return %1, %c0_i32 : i32, i32
  }
  func.func @transform_3(%arg0: i32, %arg1: i32, %arg2: memref<4xf32, #tpu.memory_space<smem>>) -> (i32, i32) {
    %c1_i32 = arith.constant 1 : i32
    %0 = arith.muli %arg0, %c1_i32 : i32
    %1 = arith.addi %0, %arg1 : i32
    %c0_i32 = arith.constant 0 : i32
    %c0_i32_0 = arith.constant 0 : i32
    return %1, %c0_i32 : i32, i32
  }
  func.func @transform_4(%arg0: i32, %arg1: i32, %arg2: memref<4xf32, #tpu.memory_space<smem>>) -> (i32, i32) {
    %c1_i32 = arith.constant 1 : i32
    %0 = arith.muli %arg0, %c1_i32 : i32
    %1 = arith.addi %0, %arg1 : i32
    %c0_i32 = arith.constant 0 : i32
    %c0_i32_0 = arith.constant 0 : i32
    return %1, %c0_i32 : i32, i32
  }
  func.func @transform_5(%arg0: i32, %arg1: i32, %arg2: memref<4xf32, #tpu.memory_space<smem>>) -> (i32, i32, i32) {
    %c0_i32 = arith.constant 0 : i32
    %c0_i32_0 = arith.constant 0 : i32
    %c0_i32_1 = arith.constant 0 : i32
    return %arg0, %c0_i32, %c0_i32_0 : i32, i32, i32
  }
}

</mosaic_0001>

<bundles_post_ra>
// kernel: tpu_custom_call.1
= control target key start
LH: loop header
LB: loop body
LE: loop exit
PB: predicated region body
PF: predicated region fallthrough
CT: control target
= control target key end

     0   :  { %s1212_s0 = inlined_call_operand.vmem [shape: f32[4], index: 0, kind: input, shape index: {}]   ;;  %s1213_s1 = inlined_call_operand.vmem [shape: f32[16,16], index: 1, kind: input, shape index: {}]   ;;  %s1214_s2 = inlined_call_operand.vmem [shape: f32[2,16,16], index: 2, kind: input, shape index: {}]   ;;  %s1215_s3 = inlined_call_operand.vmem [shape: f32[64,16], index: 3, kind: input, shape index: {}]   ;;  %s1216_s4 = inlined_call_operand.vmem [shape: f32[64,16], index: 4, kind: input, shape index: {}]   ;;  %s1217_s5 = inlined_call_operand.vmem [shape: f32[64,16], index: 5, kind: input, shape index: {}]   ;;  %s1218_s6 = inlined_call_operand.hbm [shape: f32[2,8,128], index: 6, kind: output, shape index: {}]  }
   0x1   :  { %s11_s23 = sshll.u32 %s1212_s0, 4  ;;  %s12_s23 = int_to_ptr.vmem [resolvable:$true] %s11_s23 }
   0x2   :  { %s917_s24 = scalar_lea.vmem %s12_s23, 16  ;;  %p922_p1 = scmp.lt.s32.totalorder %s12_s23, %s12_s23 }
   0x3   :  { %p918_p0 = scmp.ne.s32.totalorder %s12_s23, %s917_s24  ;;  %p923_p2 = scmp.lt.s32.totalorder %s917_s24, %s917_s24 }
   0x5   :  { %p924_p3 = por %p923_p2, %p922_p1 }
   0x7   :  { %p925_p4 = pnand %p924_p3, %p918_p0 }
   0x9   :  { %928 = shalt.err (!%p925_p4)  }
   0xa   :  { %s1011_s25 = smov [#allocation4]  }
   0xb   :  { %14 = dma.vmem_to_smem %s12_s23, 16, %s1011_s25, [#allocation3] }
   0xc   :  { %981 = dma.done.wait [#allocation3], 16 }
   0xd   :  { %982 = vsyncadd [#allocation3], 4294967280 }
   0xe   :  { %16 = sfence }
   0xf   :  { %17 = vsyncpa [#allocation6], 0 }
  0x10   :  { %19 = vsyncpa [#allocation6 + $0x1], 0  ;;  %s1052_s26 = smov 0   ;;  %s1054_s27 = smov 0  }
  0x11   :  { %s1056_s0 = smov 0   ;;  %s1058_s28 = smov 0  }
  0x12   :  { %s1060_s29 = smov 0   ;;  %s1062_s30 = smov 0  }
  0x13 LB: > { %s777_s7 = sadd.s32 4294967295, %s1009_s30   ;;  %s778_s8 = sadd.s32 4294967294, %s1009_s30   ;;  %s1009_s30 = sphi %s1062_s30, %s25_s30   ;;  %s1005_s29 = sphi %s1060_s29, %s1225_s29   ;;  %s1001_s28 = sphi %s1058_s28, %s1224_s28   ;;  %s997_s0 = sphi %s1056_s0, %s1223_s0   ;;  %s993_s27 = sphi %s1054_s27, %s1222_s27   ;;  %s989_s26 = sphi %s1052_s26, %s1221_s26  }
  0x14   : > { %s37_s9 = sadd.s32 1, %s1005_s29  ;;  %s170_s10 = sadd.s32 1, %s997_s0 }
  0x15   : > { %p39_p5 = scmp.ge.s32.totalorder %s37_s9, 2  ;;  %p180_p6 = scmp.ne.s32.totalorder %s997_s0, %s993_s27 }
  0x16   : > { %p181_p7 = scmp.eq.s32.totalorder %s777_s7, 1  ;;  %p186_p8 = scmp.ne.s32.totalorder %s993_s27, %s989_s26 }
  0x17   : > { %s1227_s9 = smov (%p39_p5, %s37_s9), 0  ;;  %p187_p10 = scmp.eq.s32.totalorder %s778_s8, 1 }
  0x18   : > { %p1092_p9 = por %p181_p7, %p180_p6  ;;  %s167_s12 = ssub.s32 %s1005_s29, %s1227_s9 }
  0x19   : > { %p781_p11 = scmp.ge.s32.totalorder %s1009_s30, 1  ;;  %p168_p12 = scmp.eq.s32.totalorder %s167_s12, 0 }
  0x1a   : > { %p1099_p13 = por %p187_p10, %p186_p8  ;;  %p244_p0 = scmp.lt.s32.totalorder %s1009_s30, 3 }
  0x1b   : > { %s1105_s14 = scalar_select %p168_p12, %s997_s0, %s170_s10  }
  0x1c   : > { %p245_p1 = pnand %p781_p11, %p244_p0 }
  0x1d   : > { %v316_v0 = vld [vmem:[%s1213_s1] sm:$0xff] (!%p245_p1)  ;;  %v317_v1 = vld [vmem:[%s1213_s1 + $0x8] sm:$0xff] (!%p245_p1)  ;;  %s783_s19 = sshll.u32 (!%p245_p1), %s1001_s28, 2  ;;  %vm313_vm0 = vcmask (!%p245_p1), 130048   ;;  %v1012_v9 = vmov (!%p245_p1), 0.0   ;;  %s791_s24 = sshll.u32 (!%p245_p1), %s1001_s28, 1 }
  0x1e   : > { %248 = sbr.rel (%p245_p1) target bundleno = 514 (0x202), region = 40  ;;  %v842_v2 = vpack.c.bf16 (!%p245_p1), %v317_v1, %v316_v0  ;;  %p287_p2 = scmp.lt.s32.totalorder (!%p245_p1), %s783_s19, 7  ;;  %832 = vmatprep.mubr.msk.f32.mxu0 (!%p245_p1), %vm313_vm0, %v316_v0  ;;  %315 = vst.msk [vmem:[#allocation2 + $0x8] sm:$0xff] (!%p245_p1), %vm313_vm0, %v1012_v9  ;;  %314 = vst.msk [vmem:[#allocation2] sm:$0xff] (!%p245_p1), %vm313_vm0, %v1012_v9  ;;  %v790_v41 = vld [vmem:[%s1214_s2 + $0x18] sm:$0xff] (!%p245_p1)  ;;  %v319_v44 = vld [vmem:[%s1214_s2 + $0x8] sm:$0xff] (!%p245_p1) }
  0x1f   : > { %s524_s10 = sld [smem:[#allocation4 + %s791_s24]] (!%p245_p1)  ;;  %s633_s12 = sadd.s32 (!%p245_p1), 1, %s791_s24  ;;  %v789_v46 = vld [vmem:[%s1214_s2 + $0x10] sm:$0xff] (!%p245_p1)  ;;  %v318_v48 = vld [vmem:[%s1214_s2] sm:$0xff] (!%p245_p1) }
  0x20   : > { %843 = vmatprep.subr.bf16.mxu1 (!%p245_p1), %v842_v2  ;;  %s1135_s15 = sld [smem:[#allocation4 + %s633_s12]] (!%p245_p1)  ;;  %s801_s16 = sshll.u32 (!%p245_p1), %s1001_s28, 7 }
  0x21   : > { %845 = vmatpush3.bf16.msra.mxu1 (!%p245_p1), %v842_v2  ;;  %s1165_s21 = scalar_lea.hbm (!%p245_p1), %s1218_s6, %s801_s16  ;;  %s1013_s28 = smov (!%p245_p1), [#allocation5]  }
  0x22   : > { %s933_s24 = sshll.u32 (!%p245_p1), %s1013_s28, 4  ;;  %s934_s24 = int_to_ptr.vmem [resolvable:$false] %s933_s24 }
  0x23   : > { %s935_s25 = scalar_lea.vmem (!%p245_p1), %s934_s24, 256 }
  0x25   : > { %s1229_s19 = smov (!%p287_p2, %s783_s19), 7  ;;  %v529_v16 = vstv %s524_s10 }
  0x26   : > { %s1115_s20 = sshll.u32 %s1229_s19, 3  ;;  %v639_v27 = vstv %s1135_s15 }
  0x27   : > { %s298_s23 = scalar_lea.vmem %s1216_s4, %s1115_s20  ;;  %s290_s8 = scalar_lea.vmem %s1215_s3, %s1115_s20 }
  0x28   : > { %v427_v3 = vld [vmem:[%s298_s23] sm:$0xff]  ;;  %v428_v4 = vld [vmem:[%s298_s23 + $0x8] sm:$0xff]  ;;  %v542_v5 = vld [vmem:[%s298_s23 + $0x10] sm:$0xff]  ;;  %s306_s18 = scalar_lea.vmem %s1217_s5, %s1115_s20 }
  0x29   : > { %v846_v6 = vpack.c.bf16 %v428_v4, %v427_v3  ;;  %822 = vmatprep.mubr.msk.f32.mxu1 %vm313_vm0, %v427_v3  ;;  %v543_v7 = vld [vmem:[%s298_s23 + $0x18] sm:$0xff]  ;;  %v430_v10 = vld [vmem:[%s290_s8 + $0x8] sm:$0xff]  ;;  %v429_v11 = vld [vmem:[%s290_s8] sm:$0xff]  ;;  %v531_v24 = vsub.f32 %v428_v4, %v529_v16  ;;  %v530_v26 = vsub.f32 %v427_v3, %v529_v16  ;;  %v640_v43 = vsub.f32 %v542_v5, %v639_v27 }
  0x2a   : > { %823 = vmatmul.mubr.msk.f32.vlgmr.msra.gmra.mrb[0].mxu1 %vm313_vm0, %v428_v4  ;;  %v850_v8 = vpack.c.bf16 %v543_v7, %v542_v5  ;;  %v515_v12 = vmul.f32 %v430_v10, %v430_v10  ;;  %v514_v13 = vmul.f32 %v429_v11, %v429_v11  ;;  %v545_v14 = vld [vmem:[%s290_s8 + $0x18] sm:$0xff]  ;;  %v544_v15 = vld [vmem:[%s290_s8 + $0x10] sm:$0xff]  ;;  %v432_v21 = vld [vmem:[%s306_s18 + $0x8] sm:$0xff]  ;;  %v641_v37 = vsub.f32 %v543_v7, %v639_v27  ;;  %s282_s8 = sand.u32 1, %s993_s27  }
  0x2b   : > { %847 = vmatprep.subr.bf16.mxu0 %v846_v6  ;;  %825 = vmatprep.mubr.msk.f32.mxu1 %vm313_vm0, %v542_v5  ;;  %v624_v19 = vmul.f32 %v545_v14, %v545_v14  ;;  %v623_v23 = vmul.f32 %v544_v15, %v544_v15  ;;  %v431_v25 = vld [vmem:[%s306_s18] sm:$0xff]  ;;  %v547_v33 = vld [vmem:[%s306_s18 + $0x18] sm:$0xff]  ;;  %v533_v36 = vand.u32 2147483647, %v531_v24  ;;  %v546_v40 = vld [vmem:[%s306_s18 + $0x10] sm:$0xff]  ;;  %s782_s10 = sshll.u32 %s282_s8, 3 }
  0x2c   : > { %849 = vmatpush3.bf16.msra.mxu0 %v846_v6  ;;  %v517_v18 = vmul.f32 -61.685028, %v515_v12  ;;  %v516_v22 = vmul.f32 -61.685028, %v514_v13  ;;  %v532_v42 = vand.u32 2147483647, %v530_v26 }
  0x2d   : > { %851 = vmatprep.subr.bf16.mxu0 %v850_v8  ;;  %v626_v30 = vmul.f32 -61.685028, %v624_v19  ;;  %v625_v35 = vmul.f32 -61.685028, %v623_v23  ;;  %v535_v53 = vmul.f32 %v790_v41, %v533_v36  ;;  %v643_v54 = vand.u32 2147483647, %v641_v37 }
  0x2e   : > { %826 = vmatmul.mubr.msk.f32.gmra.mrb[2].mxu1 %vm313_vm0, %v543_v7  ;;  %v519_v28 = vmul.f32 %v517_v18, %v432_v21  ;;  %v518_v32 = vmul.f32 %v516_v22, %v431_v25  ;;  %v534_v58 = vmul.f32 %v789_v46, %v532_v42  ;;  %v642_v59 = vand.u32 2147483647, %v640_v43  ;;  %v525_v5 = vld [vmem:[#allocation2] sm:$0xff]  ;;  %s284_s12 = scalar_lea.vmem [#allocation5], %s782_s10  ;;  %s673_s22 = scalar_lea.sflag [#allocation6], %s282_s8 }
  0x2f   : > { %833 = vmatmul.mubr.msk.f32.vlgmr.msra.gmra.mrb[0].mxu0 %vm313_vm0, %v317_v1  ;;  %v628_v49 = vmul.f32 %v626_v30, %v547_v33  ;;  %v627_v52 = vmul.f32 %v625_v35, %v546_v40  ;;  %v645_v3 = vmul.f32 %v790_v41, %v643_v54  ;;  %s686_s15 = sshll.u32 %s284_s12, 4  ;;  %s1167_s15 = int_to_ptr.vmem [resolvable:$true] %s686_s15 }
  0x30   : > { %853 = vmatpush3.bf16.msra.mxu0 %v850_v8  ;;  %839 = vmatprep.mubr.msk.f32.mxu0 %vm313_vm0, %v316_v0  ;;  %v526_v0 = vld [vmem:[#allocation2 + $0x8] sm:$0xff]  ;;  %v644_v7 = vmul.f32 %v789_v46, %v642_v59  ;;  %s929_s23 = scalar_lea.vmem %s1167_s15, 128  ;;  %p936_p6 = scmp.lt.s32.totalorder %s1167_s15, %s934_s24 }
  0x31   : > { %p930_p3 = scmp.ne.s32.totalorder %s1167_s15, %s929_s23  ;;  %p937_p7 = scmp.lt.s32.totalorder %s935_s25, %s929_s23 }
  0x33   : > { %840 = vmatmul.mubr.msk.f32.vlgmr.msra.gmra.mrb[2].mxu0 %vm313_vm0, %v317_v1  ;;  %p931_p4 = pnand %p930_p3, %p1092_p9  ;;  %p938_p8 = por %p937_p7, %p936_p6 }
  0x35   : > { %p932_p5 = pneg %p931_p4 }
  0x37   : > { %p939_p10 = pnand %p938_p8, %p932_p5 }
  0xfd   : > { %v824_v17 = vpop.f32.mrb[0].mxu1 }
  0xfe   : > { %v408_v20 = vpop.f32.mrb[1].mxu1 }
 0x101   : > { %v827_v29 = vpop.f32.mrb[2].mxu1 }
 0x102   : > { %v834_v31 = vpop.f32.mrb[0].mxu0  ;;  %v418_v34 = vpop.f32.mrb[3].mxu1 }
 0x103   : > { %v511_v38 = vadd.f32 %v834_v31, %v824_v17  ;;  %v505_v39 = vpop.f32.mrb[1].mxu0 }
 0x104   : > { %v506_v45 = vadd.f32 %v505_v39, %v408_v20 }
 0x105   : > { %v521_v47 = vsub.f32 %v511_v38, %v519_v28 }
 0x106   : > { %v520_v50 = vsub.f32 %v506_v45, %v518_v32  ;;  %v841_v51 = vpop.f32.mrb[2].mxu0 }
 0x107   : > { %v523_v55 = vmul.f32 %v521_v47, %v319_v44  ;;  %v620_v56 = vadd.f32 %v841_v51, %v827_v29  ;;  %v614_v57 = vpop.f32.mrb[3].mxu0 }
 0x108   : > { %v522_v60 = vmul.f32 %v520_v50, %v318_v48  ;;  %v615_v61 = vadd.f32 %v614_v57, %v418_v34 }
 0x109   : > { %v528_v62 = vand.u32 2147483647, %v523_v55  ;;  %v630_v63 = vsub.f32 %v620_v56, %v628_v49 }
 0x10a   : > { %v527_v1 = vand.u32 2147483647, %v522_v60  ;;  %v629_v2 = vsub.f32 %v615_v61, %v627_v52 }
 0x10b   : > { %v537_v4 = vadd.f32 %v535_v53, %v528_v62  ;;  %v632_v6 = vmul.f32 %v630_v63, %v319_v44 }
 0x10c   : > { %v536_v8 = vadd.f32 %v534_v58, %v527_v1  ;;  %v631_v9 = vmul.f32 %v629_v2, %v318_v48 }
 0x10d   : > { %v539_v10 = vadd.f32 %v537_v4, %v526_v0  ;;  %v638_v11 = vand.u32 2147483647, %v632_v6 }
 0x10e   : > { %v538_v12 = vadd.f32 %v536_v8, %v525_v5  ;;  %v637_v13 = vand.u32 2147483647, %v631_v9 }
 0x10f   : > { %541 = vst.msk [vmem:[#allocation2 + $0x8] sm:$0xff] %vm313_vm0, %v539_v10  ;;  %v647_v14 = vadd.f32 %v645_v3, %v638_v11 }
 0x110   : > { %540 = vst.msk [vmem:[#allocation2] sm:$0xff] %vm313_vm0, %v538_v12  ;;  %v646_v15 = vadd.f32 %v644_v7, %v637_v13 }
 0x116   : > { %v636_v16 = vld [vmem:[#allocation2 + $0x8] sm:$0xff] }
 0x117   : > { %v649_v17 = vadd.f32 %v647_v14, %v636_v16  ;;  %v635_v18 = vld [vmem:[#allocation2] sm:$0xff] }
 0x118   : > { %v648_v19 = vadd.f32 %v646_v15, %v635_v18 }
 0x119   : > { %651 = vst.msk [vmem:[#allocation2 + $0x8] sm:$0xff] %vm313_vm0, %v649_v17 }
 0x11a   : > { %650 = vst.msk [vmem:[#allocation2] sm:$0xff] %vm313_vm0, %v648_v19 }
 0x120   : > { %v656_v20 = vld [vmem:[#allocation2 + $0x8] sm:$0xff] }
 0x121   : > { %v655_v21 = vld [vmem:[#allocation2] sm:$0xff]  ;;  %v658_v22 = vsel %vm313_vm0, %v656_v20, 0.0 }
 0x122   : > { %v657_v23 = vsel %vm313_vm0, %v655_v21, 0.0 }
 0x123   : > { %v659_v24 = vadd.f32 %v658_v22, %v657_v23 }
 0x125   : > { %660 = vadd.xlane.f32.xlu0 %v659_v24 }
 0x1b2   : > { %v661_v25 = vpop.xlane.xlu0 %660 }
 0x1b3   : > { %v662_v26 = vrot.slane %v661_v25, 4 }
 0x1b5   : > { %v663_v27 = vadd.f32 %v662_v26, %v661_v25 }
 0x1b7   : > { %v664_v28 = vrot.slane %v663_v27, 2 }
 0x1b9   : > { %v665_v29 = vadd.f32 %v664_v28, %v663_v27 }
 0x1bb   : > { %v666_v30 = vrot.slane %v665_v29, 1 }
 0x1bd   : > { %v667_v31 = vadd.f32 %v666_v30, %v665_v29 }
 0x1bf   : > { %858 = vpush %v667_v31 }
 0x1f0   : > { %s859_s17 = spop %858 }
 0x1f1   : > { %s669_s18 = smul.f32 0.0017361111, %s859_s17 }
 0x1f3   : > { %v670_v32 = vstv %s669_s18 }
 0x1f4   : > { %671 = vst [vmem:[%s284_s12] sm:$0xff] %v670_v32 }
 0x1f5   : > { %942 = shalt.err (!%p939_p10)
}
 0x1f6   : > { %s943_s7 = scalar_lea.hbm %s1165_s21, 128  ;;  %s947_s12 = scalar_lea.hbm %s1218_s6, 256 }
 0x1f7   : > { %p944_p11 = scmp.ne.s32.totalorder %s1165_s21, %s943_s7  ;;  %p948_p1 = scmp.lt.u32.totalorder %s1165_s21, %s1218_s6 }
 0x1f8   : > { %p949_p2 = scmp.lt.u32.totalorder %s947_s12, %s943_s7  ;;  %p951_p4 = scmp.lt.u32.totalorder %s943_s7, %s1165_s21 }
 0x1f9   : > { %p945_p12 = pnand %p944_p11, %p1092_p9 }
 0x1fa   : > { %p950_p3 = por %p949_p2, %p948_p1 }
 0x1fb   : > { %p946_p0 = pneg %p945_p12 }
 0x1fc   : > { %p952_p5 = por %p951_p4, %p950_p3 }
 0x1fe   : > { %p953_p6 = pnand %p952_p5, %p946_p0 }
 0x200   : > { %956 = shalt.err (!%p953_p6)
}
 0x201   : > { %860 = dma.vmem_to_hbm [thread:$0]  (%p1092_p9), %s1167_s15, 128, %s1165_s21, %s673_s22  }
 0x202 PF: > { %p866_p7 = scmp.ge.s32.totalorder %s1009_s30, 2  ;;  %s698_s18 = sand.u32 1, %s989_s26  }
 0x203   : > { %s699_s19 = scalar_lea.sflag [#allocation6], %s698_s18 }
 0x204   : > { %p863_p8 = pnand %p866_p7, %p1099_p13 }
 0x206   : > { %984 = dma.done.wait (!%p863_p8), %s699_s19, 128  }
 0x207   : > { %986 = vsyncadd (!%p863_p8), %s699_s19, 4294967168  ;;  %s25_s30 = sadd.s32 1, %s1009_s30   ;;  %s1221_s26 = smov %s993_s27 }
 0x208   : > { %p22_p10 = scmp.ge.s32.totalorder %s25_s30, 4   ;;  %s1222_s27 = smov %s997_s0 }
 0x209   : > { %s1223_s0 = smov %s1105_s14  ;;  %s1224_s28 = smov %s1005_s29 }
 0x20a   : > { %s1225_s29 = smov %s1227_s9  ;;  %24 = sbr.rel (!%p22_p10) target bundleno = 19 (0x13), region = 90 }
 0x211   :  { %704 = vsyncpa [#allocation6], 1 }
 0x212   :  { %706 = vsyncpa [#allocation6 + $0x1], 1 }

</bundles_post_ra>
